<compile_context>
chip_gen: v7x
topology: tpu7x:2x2x1
jax: 0.10.0
libtpu: 0.0.40
codegen_flags: <defaults>
</compile_context>

<pallas_src>
import math

import jax
import jax.numpy as jnp
import numpy as np
from jax import lax
from jax.experimental import pallas as pl
from jax.experimental.pallas import tpu as pltpu


def _round_up(x: int, m: int) -> int:
    return ((x + m - 1) // m) * m


def _vmem_capacity_bytes() -> int:
    try:
        return int(pltpu.get_tpu_info().vmem_capacity_bytes)
    except Exception:
        return 64 << 20  # conservative (v7x-sized) fallback


def _choose_fold(C: int, P: int) -> int:
    """Number of BEV cells packed into the lane dim.  Always a power of two,
    divides P, and fold*C is a multiple of 128 whenever C divides 128 (the
    common PointPillars case, e.g. C=64 -> fold=2)."""
    fold = max(1, 128 // math.gcd(C, 128))
    while fold > 1 and P % fold != 0:
        fold //= 2
    return fold


def _choose_tile_rows(P_rows: int, row_bytes: int, budget: int) -> int:
    """Largest row-tile that divides P_rows, is a multiple of 8 (sublane), and
    keeps one physically padded output buffer under `budget` bytes."""
    cap = max(8, budget // max(1, row_bytes))
    if P_rows <= cap:
        return P_rows
    d = (min(cap, P_rows) // 8) * 8
    while d >= 8:
        if P_rows % d == 0:
            return d
        d -= 8
    return P_rows  # fallback: full extent (always a legal block)


def _make_scatter_kernel(M: int, TPR: int, fold: int, C: int, nseg: int):
    def kernel(off_ref, rows_ref, pillars_ref, out_ref):
        # off_ref     : SMEM (B*(nseg+1),) int32 -- bucket boundaries (prefetch)
        # rows_ref    : SMEM (B*M,)        int32 -- sorted global folded row / pillar
        # pillars_ref : VMEM (1, M, C)            -- this batch's pillars, bucket order
        # out_ref     : VMEM (1, TPR, fold*C)     -- folded BEV rows [j*TPR,(j+1)*TPR)
        b = pl.program_id(0)
        j = pl.program_id(1)
        row_base = j * TPR
        seg0 = b * (nseg + 1) + j * fold
        mbase = b * M

        # Each (b, j) grid step exclusively owns this block -> zero it here.
        # With the folded layout this is a lane-dense fill.
        out_ref[...] = jnp.zeros_like(out_ref)

        # One sub-loop per lane slot: every pillar in [start, end) is guaranteed
        # to land in this tile at lane offset s*C -> no bounds check, no branch,
        # and all lane offsets are static (only the sublane row is dynamic).
        for s in range(fold):
            lane0 = s * C
            start = off_ref[seg0 + s]
            end = off_ref[seg0 + s + 1]

            def body(m, carry, lane0=lane0):
                row = rows_ref[mbase + m] - row_base
                out_ref[0, pl.ds(row, 1), pl.ds(lane0, C)] = \
                    pillars_ref[0, pl.ds(m, 1), :]
                return carry

            # Sequential stores within a bucket => last-write-wins for duplicate
            # coordinates (the stable sort preserved original pillar order).
            # TODO(synk): dynamic trip count prevents fori_loop unrolling here.
            lax.fori_loop(start, end, body, 0)

    return kernel


def point_pillar_scatter(pillar_features, voxel_coords, *, num_bev_features,
                         grid_size):
    """pillar_features: (B, C, M) float32, voxel_coords: (B, M, 3) int32."""
    nx, ny, nz = int(grid_size[0]), int(grid_size[1]), int(grid_size[2])
    assert nz == 1
    B, C, M = pillar_features.shape
    assert C == num_bev_features
    P = nz * nx * ny
    itemsize = 4

    # Flat index, exactly the PyTorch formula: idx = z + y*nx + x.
    flat = (voxel_coords[..., 0]
            + voxel_coords[..., 1] * nx
            + voxel_coords[..., 2]).astype(jnp.int32)            # (B, M)

    # ---- lane-dense folding & generation-aware tiling -----------------------
    fold = _choose_fold(C, P)          # cells packed into the lane dim (pow2)
    W = fold * C                       # output row width (lane dim)
    P_rows = P // fold                 # folded BEV rows per batch

    cap = _vmem_capacity_bytes()
    W_phys = _round_up(W, 128)
    pillar_buf = _round_up(M, 8) * _round_up(C, 128) * itemsize  # 1 buffer, padded
    out_budget = (4 << 20) if cap <= (64 << 20) else (8 << 20)
    avail = max(1 << 19, ((cap * 3) // 4 - 2 * pillar_buf) // 2)
    out_budget = min(out_budget, avail)
    TPR = _choose_tile_rows(P_rows, W_phys * itemsize, out_budget)
    num_tiles = P_rows // TPR
    TP = TPR * fold                    # flat BEV cells per output tile
    nseg = num_tiles * fold            # (tile, lane-slot) buckets per batch

    # ---- bucket pillars by (tile, lane slot) with a STABLE sort --------------
    # key < 0 (negative flat) and key >= nseg (flat >= P) fall outside every
    # [seg, seg+1) range and are silently dropped.
    key = (flat // TP) * fold + (flat % fold)                    # (B, M)
    order = jnp.argsort(key, axis=1, stable=True)                # (B, M)
    key_sorted = jnp.take_along_axis(key, order, axis=1)
    flat_sorted = jnp.take_along_axis(flat, order, axis=1)
    rows_sorted = (flat_sorted // fold).astype(jnp.int32)        # global folded row
    pillars_mc = jnp.transpose(pillar_features, (0, 2, 1))       # (B, M, C)
    pillars_sorted = jnp.take_along_axis(pillars_mc, order[:, :, None], axis=1)

    seg_bounds = jnp.arange(nseg + 1, dtype=key.dtype)
    offsets = jax.vmap(
        lambda k: jnp.searchsorted(k, seg_bounds, side='left'))(key_sorted)
    offsets = offsets.astype(jnp.int32).reshape(B * (nseg + 1))  # tiny SMEM table
    rows_flat = rows_sorted.reshape(B * M)

    kernel = _make_scatter_kernel(M, TPR, fold, C, nseg)

    out_buf = TPR * W_phys * itemsize
    vmem_limit = int(min(cap, max(32 << 20,
                                  2 * out_buf + 2 * pillar_buf + (4 << 20))))

    out_folded = pl.pallas_call(
        kernel,
        out_shape=jax.ShapeDtypeStruct((B, P_rows, W), pillar_features.dtype),
        grid_spec=pltpu.PrefetchScalarGridSpec(
            num_scalar_prefetch=2,
            grid=(B, num_tiles),
            in_specs=[
                pl.BlockSpec((1, M, C), lambda b, j, off, rows: (b, 0, 0)),
            ],
            out_specs=pl.BlockSpec((1, TPR, W), lambda b, j, off, rows: (b, j, 0)),
        ),
        compiler_params=pltpu.CompilerParams(
            dimension_semantics=("parallel", "parallel"),
            vmem_limit_bytes=vmem_limit),
        cost_estimate=pl.CostEstimate(
            flops=0,
            transcendentals=0,
            bytes_accessed=B * (P_rows * W * itemsize
                                + M * C * itemsize + M * 8)),
    )(offsets, rows_flat, pillars_sorted)

    # (B, P_rows, fold*C) -> (B, P, C) -> (B, C, P) -> same .view() as PyTorch.
    out_pc = out_folded.reshape(B, P, C)
    return jnp.transpose(out_pc, (0, 2, 1)).reshape(B, C * nz, ny, nx)


if __name__ == "__main__":
    key = jax.random.PRNGKey(0)

    # Small deterministic example (PointPillarScatter has no learned params).
    B, C, M = 2, 8, 32
    nx, ny, nz = 16, 16, 1
    P = nz * nx * ny

    k_feat, k_idx = jax.random.split(key)
    pillar_features = jax.random.normal(k_feat, (B, C, M), dtype=jnp.float32)

    # Unique flat indices per batch, decomposed into (z, y, x) with z == 0.
    coords_list = []
    for b in range(B):
        k_idx, sub = jax.random.split(k_idx)
        flat_idx = np.asarray(jax.random.permutation(sub, P)[:M], dtype=np.int32)
        z = np.zeros((M,), dtype=np.int32)
        y = flat_idx // nx
        x = flat_idx % nx
        coords_list.append(np.stack([z, y, x], axis=-1))
    coords_np = np.stack(coords_list, axis=0)                  # (B, M, 3)
    # Inject a duplicate index in batch 1 to exercise last-write-wins.
    coords_np[1, M - 1] = coords_np[1, 0]
    voxel_coords = jnp.asarray(coords_np, dtype=jnp.int32)

    out = point_pillar_scatter(pillar_features, voxel_coords,
                               num_bev_features=C, grid_size=(nx, ny, nz))
    out = jax.block_until_ready(out)

    # Reference: sequential scatter (last write wins), matching PyTorch's
    # `spatial_feature[:, indices] = pillars`.
    pf = np.asarray(pillar_features)
    ref = np.zeros((B, C, P), dtype=np.float32)
    for b in range(B):
        for m in range(M):
            fi = int(coords_np[b, m, 0]
                     + coords_np[b, m, 1] * nx
                     + coords_np[b, m, 2])
            ref[b, :, fi] = pf[b, :, m]
    ref = ref.reshape(B, C * nz, ny, nx)

    assert out.shape == (B, C * nz, ny, nx)
    assert np.allclose(np.asarray(out), ref, atol=1e-6, rtol=1e-6)
    print("KERNEL_OK")
</pallas_src>

<mosaic_0001>
module attributes {stable_mosaic.version = 11 : i64} {
  func.func @kernel(%arg0: i32, %arg1: i32, %arg2: memref<34xi32, #tpu.memory_space<smem>>, %arg3: memref<64xi32, #tpu.memory_space<smem>>, %arg4: memref<1x32x8xf32, #tpu.memory_space<vmem>>, %arg5: memref<1x16x128xf32, #tpu.memory_space<vmem>>) attributes {dimension_semantics = [#tpu.dimension_semantics<parallel>, #tpu.dimension_semantics<parallel>], iteration_bounds = array<i64: 2, 1>, scalar_prefetch = 2 : i64, scratch_operands = 0 : i64, tpu.core_type = #tpu.core_type<tc>, window_params = [{transform_indices = @transform_0, window_bounds = array<i64: 1, 32, 8>}, {transform_indices = @transform_1, window_bounds = array<i64: 1, 16, 128>}]} {
    %c16_i32 = arith.constant 16 : i32
    %0 = arith.muli %arg1, %c16_i32 : i32
    %c17_i32 = arith.constant 17 : i32
    %1 = arith.muli %arg0, %c17_i32 : i32
    %c16_i32_0 = arith.constant 16 : i32
    %2 = arith.muli %arg1, %c16_i32_0 : i32
    %3 = arith.addi %1, %2 : i32
    %c32_i32 = arith.constant 32 : i32
    %4 = arith.muli %arg0, %c32_i32 : i32
    %cst = arith.constant 0.000000e+00 : f32
    %5 = vector.broadcast %cst : f32 to vector<1x16x128xf32>
    %c0 = arith.constant 0 : index
    %c0_1 = arith.constant 0 : index
    %c0_2 = arith.constant 0 : index
    %6 = vector.load %arg5[%c0, %c0_1, %c0_2] : memref<1x16x128xf32, #tpu.memory_space<vmem>>, vector<1x16x128xf32>
    tpu.vector_store %arg5[%c0, %c0_1, %c0_2], %5 {strides = array<i32>} : memref<1x16x128xf32, #tpu.memory_space<vmem>>, vector<1x16x128xf32>,
    %c0_i32 = arith.constant 0 : i32
    %7 = arith.addi %3, %c0_i32 : i32
    %8 = arith.index_cast %7 : i32 to index
    %9 = memref.load %arg2[%8] : memref<34xi32, #tpu.memory_space<smem>>
    %c0_i32_3 = arith.constant 0 : i32
    %10 = arith.addi %3, %c0_i32_3 : i32
    %c1_i32 = arith.constant 1 : i32
    %11 = arith.addi %10, %c1_i32 : i32
    %12 = arith.index_cast %11 : i32 to index
    %13 = memref.load %arg2[%12] : memref<34xi32, #tpu.memory_space<smem>>
    %c0_i32_4 = arith.constant 0 : i32
    %14 = arith.subi %13, %9 : i32
    %15 = arith.addi %9, %14 : i32
    %c1_i32_5 = arith.constant 1 : i32
    scf.for %arg6 = %9 to %15 step %c1_i32_5  : i32 {
      %151 = arith.addi %4, %arg6 : i32
      %152 = arith.index_cast %151 : i32 to index
      %153 = memref.load %arg3[%152] : memref<64xi32, #tpu.memory_space<smem>>
      %154 = arith.subi %153, %0 : i32
      %c0_67 = arith.constant 0 : index
      %155 = arith.index_cast %arg6 : i32 to index
      %c0_68 = arith.constant 0 : index
      %156 = vector.load %arg4[%c0_67, %155, %c0_68] : memref<1x32x8xf32, #tpu.memory_space<vmem>>, vector<1x1x8xf32>
      %157 = vector.shape_cast %156 : vector<1x1x8xf32> to vector<1x8xf32>
      %c0_69 = arith.constant 0 : index
      %158 = arith.index_cast %154 : i32 to index
      %c0_70 = arith.constant 0 : index
      %159 = vector.load %arg5[%c0_69, %158, %c0_70] : memref<1x16x128xf32, #tpu.memory_space<vmem>>, vector<1x1x8xf32>
      %160 = vector.shape_cast %159 : vector<1x1x8xf32> to vector<1x8xf32>
      %161 = vector.shape_cast %157 : vector<1x8xf32> to vector<1x1x8xf32>
      tpu.vector_store %arg5[%c0_69, %158, %c0_70], %161 {strides = array<i32>} : memref<1x16x128xf32, #tpu.memory_space<vmem>>, vector<1x1x8xf32>,
    }
    %c1_i32_6 = arith.constant 1 : i32
    %16 = arith.addi %3, %c1_i32_6 : i32
    %17 = arith.index_cast %16 : i32 to index
    %18 = memref.load %arg2[%17] : memref<34xi32, #tpu.memory_space<smem>>
    %c1_i32_7 = arith.constant 1 : i32
    %19 = arith.addi %3, %c1_i32_7 : i32
    %c1_i32_8 = arith.constant 1 : i32
    %20 = arith.addi %19, %c1_i32_8 : i32
    %21 = arith.index_cast %20 : i32 to index
    %22 = memref.load %arg2[%21] : memref<34xi32, #tpu.memory_space<smem>>
    %c0_i32_9 = arith.constant 0 : i32
    %23 = arith.subi %22, %18 : i32
    %24 = arith.addi %18, %23 : i32
    %c1_i32_10 = arith.constant 1 : i32
    scf.for %arg6 = %18 to %24 step %c1_i32_10  : i32 {
      %151 = arith.addi %4, %arg6 : i32
      %152 = arith.index_cast %151 : i32 to index
      %153 = memref.load %arg3[%152] : memref<64xi32, #tpu.memory_space<smem>>
      %154 = arith.subi %153, %0 : i32
      %c0_67 = arith.constant 0 : index
      %155 = arith.index_cast %arg6 : i32 to index
      %c0_68 = arith.constant 0 : index
      %156 = vector.load %arg4[%c0_67, %155, %c0_68] : memref<1x32x8xf32, #tpu.memory_space<vmem>>, vector<1x1x8xf32>
      %157 = vector.shape_cast %156 : vector<1x1x8xf32> to vector<1x8xf32>
      %c0_69 = arith.constant 0 : index
      %158 = arith.index_cast %154 : i32 to index
      %c8 = arith.constant 8 : index
      %159 = vector.load %arg5[%c0_69, %158, %c8] : memref<1x16x128xf32, #tpu.memory_space<vmem>>, vector<1x1x8xf32>
      %160 = vector.shape_cast %159 : vector<1x1x8xf32> to vector<1x8xf32>
      %161 = vector.shape_cast %157 : vector<1x8xf32> to vector<1x1x8xf32>
      tpu.vector_store %arg5[%c0_69, %158, %c8], %161 {strides = array<i32>} : memref<1x16x128xf32, #tpu.memory_space<vmem>>, vector<1x1x8xf32>,
    }
    %c2_i32 = arith.constant 2 : i32
    %25 = arith.addi %3, %c2_i32 : i32
    %26 = arith.index_cast %25 : i32 to index
    %27 = memref.load %arg2[%26] : memref<34xi32, #tpu.memory_space<smem>>
    %c2_i32_11 = arith.constant 2 : i32
    %28 = arith.addi %3, %c2_i32_11 : i32
    %c1_i32_12 = arith.constant 1 : i32
    %29 = arith.addi %28, %c1_i32_12 : i32
    %30 = arith.index_cast %29 : i32 to index
    %31 = memref.load %arg2[%30] : memref<34xi32, #tpu.memory_space<smem>>
    %c0_i32_13 = arith.constant 0 : i32
    %32 = arith.subi %31, %27 : i32
    %33 = arith.addi %27, %32 : i32
    %c1_i32_14 = arith.constant 1 : i32
    scf.for %arg6 = %27 to %33 step %c1_i32_14  : i32 {
      %151 = arith.addi %4, %arg6 : i32
      %152 = arith.index_cast %151 : i32 to index
      %153 = memref.load %arg3[%152] : memref<64xi32, #tpu.memory_space<smem>>
      %154 = arith.subi %153, %0 : i32
      %c0_67 = arith.constant 0 : index
      %155 = arith.index_cast %arg6 : i32 to index
      %c0_68 = arith.constant 0 : index
      %156 = vector.load %arg4[%c0_67, %155, %c0_68] : memref<1x32x8xf32, #tpu.memory_space<vmem>>, vector<1x1x8xf32>
      %157 = vector.shape_cast %156 : vector<1x1x8xf32> to vector<1x8xf32>
      %c0_69 = arith.constant 0 : index
      %158 = arith.index_cast %154 : i32 to index
      %c16 = arith.constant 16 : index
      %159 = vector.load %arg5[%c0_69, %158, %c16] : memref<1x16x128xf32, #tpu.memory_space<vmem>>, vector<1x1x8xf32>
      %160 = vector.shape_cast %159 : vector<1x1x8xf32> to vector<1x8xf32>
      %161 = vector.shape_cast %157 : vector<1x8xf32> to vector<1x1x8xf32>
      tpu.vector_store %arg5[%c0_69, %158, %c16], %161 {strides = array<i32>} : memref<1x16x128xf32, #tpu.memory_space<vmem>>, vector<1x1x8xf32>,
    }
    %c3_i32 = arith.constant 3 : i32
    %34 = arith.addi %3, %c3_i32 : i32
    %35 = arith.index_cast %34 : i32 to index
    %36 = memref.load %arg2[%35] : memref<34xi32, #tpu.memory_space<smem>>
    %c3_i32_15 = arith.constant 3 : i32
    %37 = arith.addi %3, %c3_i32_15 : i32
    %c1_i32_16 = arith.constant 1 : i32
    %38 = arith.addi %37, %c1_i32_16 : i32
    %39 = arith.index_cast %38 : i32 to index
    %40 = memref.load %arg2[%39] : memref<34xi32, #tpu.memory_space<smem>>
    %c0_i32_17 = arith.constant 0 : i32
    %41 = arith.subi %40, %36 : i32
    %42 = arith.addi %36, %41 : i32
    %c1_i32_18 = arith.constant 1 : i32
    scf.for %arg6 = %36 to %42 step %c1_i32_18  : i32 {
      %151 = arith.addi %4, %arg6 : i32
      %152 = arith.index_cast %151 : i32 to index
      %153 = memref.load %arg3[%152] : memref<64xi32, #tpu.memory_space<smem>>
      %154 = arith.subi %153, %0 : i32
      %c0_67 = arith.constant 0 : index
      %155 = arith.index_cast %arg6 : i32 to index
      %c0_68 = arith.constant 0 : index
      %156 = vector.load %arg4[%c0_67, %155, %c0_68] : memref<1x32x8xf32, #tpu.memory_space<vmem>>, vector<1x1x8xf32>
      %157 = vector.shape_cast %156 : vector<1x1x8xf32> to vector<1x8xf32>
      %c0_69 = arith.constant 0 : index
      %158 = arith.index_cast %154 : i32 to index
      %c24 = arith.constant 24 : index
      %159 = vector.load %arg5[%c0_69, %158, %c24] : memref<1x16x128xf32, #tpu.memory_space<vmem>>, vector<1x1x8xf32>
      %160 = vector.shape_cast %159 : vector<1x1x8xf32> to vector<1x8xf32>
      %161 = vector.shape_cast %157 : vector<1x8xf32> to vector<1x1x8xf32>
      tpu.vector_store %arg5[%c0_69, %158, %c24], %161 {strides = array<i32>} : memref<1x16x128xf32, #tpu.memory_space<vmem>>, vector<1x1x8xf32>,
    }
    %c4_i32 = arith.constant 4 : i32
    %43 = arith.addi %3, %c4_i32 : i32
    %44 = arith.index_cast %43 : i32 to index
    %45 = memref.load %arg2[%44] : memref<34xi32, #tpu.memory_space<smem>>
    %c4_i32_19 = arith.constant 4 : i32
    %46 = arith.addi %3, %c4_i32_19 : i32
    %c1_i32_20 = arith.constant 1 : i32
    %47 = arith.addi %46, %c1_i32_20 : i32
    %48 = arith.index_cast %47 : i32 to index
    %49 = memref.load %arg2[%48] : memref<34xi32, #tpu.memory_space<smem>>
    %c0_i32_21 = arith.constant 0 : i32
    %50 = arith.subi %49, %45 : i32
    %51 = arith.addi %45, %50 : i32
    %c1_i32_22 = arith.constant 1 : i32
    scf.for %arg6 = %45 to %51 step %c1_i32_22  : i32 {
      %151 = arith.addi %4, %arg6 : i32
      %152 = arith.index_cast %151 : i32 to index
      %153 = memref.load %arg3[%152] : memref<64xi32, #tpu.memory_space<smem>>
      %154 = arith.subi %153, %0 : i32
      %c0_67 = arith.constant 0 : index
      %155 = arith.index_cast %arg6 : i32 to index
      %c0_68 = arith.constant 0 : index
      %156 = vector.load %arg4[%c0_67, %155, %c0_68] : memref<1x32x8xf32, #tpu.memory_space<vmem>>, vector<1x1x8xf32>
      %157 = vector.shape_cast %156 : vector<1x1x8xf32> to vector<1x8xf32>
      %c0_69 = arith.constant 0 : index
      %158 = arith.index_cast %154 : i32 to index
      %c32 = arith.constant 32 : index
      %159 = vector.load %arg5[%c0_69, %158, %c32] : memref<1x16x128xf32, #tpu.memory_space<vmem>>, vector<1x1x8xf32>
      %160 = vector.shape_cast %159 : vector<1x1x8xf32> to vector<1x8xf32>
      %161 = vector.shape_cast %157 : vector<1x8xf32> to vector<1x1x8xf32>
      tpu.vector_store %arg5[%c0_69, %158, %c32], %161 {strides = array<i32>} : memref<1x16x128xf32, #tpu.memory_space<vmem>>, vector<1x1x8xf32>,
    }
    %c5_i32 = arith.constant 5 : i32
    %52 = arith.addi %3, %c5_i32 : i32
    %53 = arith.index_cast %52 : i32 to index
    %54 = memref.load %arg2[%53] : memref<34xi32, #tpu.memory_space<smem>>
    %c5_i32_23 = arith.constant 5 : i32
    %55 = arith.addi %3, %c5_i32_23 : i32
    %c1_i32_24 = arith.constant 1 : i32
    %56 = arith.addi %55, %c1_i32_24 : i32
    %57 = arith.index_cast %56 : i32 to index
    %58 = memref.load %arg2[%57] : memref<34xi32, #tpu.memory_space<smem>>
    %c0_i32_25 = arith.constant 0 : i32
    %59 = arith.subi %58, %54 : i32
    %60 = arith.addi %54, %59 : i32
    %c1_i32_26 = arith.constant 1 : i32
    scf.for %arg6 = %54 to %60 step %c1_i32_26  : i32 {
      %151 = arith.addi %4, %arg6 : i32
      %152 = arith.index_cast %151 : i32 to index
      %153 = memref.load %arg3[%152] : memref<64xi32, #tpu.memory_space<smem>>
      %154 = arith.subi %153, %0 : i32
      %c0_67 = arith.constant 0 : index
      %155 = arith.index_cast %arg6 : i32 to index
      %c0_68 = arith.constant 0 : index
      %156 = vector.load %arg4[%c0_67, %155, %c0_68] : memref<1x32x8xf32, #tpu.memory_space<vmem>>, vector<1x1x8xf32>
      %157 = vector.shape_cast %156 : vector<1x1x8xf32> to vector<1x8xf32>
      %c0_69 = arith.constant 0 : index
      %158 = arith.index_cast %154 : i32 to index
      %c40 = arith.constant 40 : index
      %159 = vector.load %arg5[%c0_69, %158, %c40] : memref<1x16x128xf32, #tpu.memory_space<vmem>>, vector<1x1x8xf32>
      %160 = vector.shape_cast %159 : vector<1x1x8xf32> to vector<1x8xf32>
      %161 = vector.shape_cast %157 : vector<1x8xf32> to vector<1x1x8xf32>
      tpu.vector_store %arg5[%c0_69, %158, %c40], %161 {strides = array<i32>} : memref<1x16x128xf32, #tpu.memory_space<vmem>>, vector<1x1x8xf32>,
    }
    %c6_i32 = arith.constant 6 : i32
    %61 = arith.addi %3, %c6_i32 : i32
    %62 = arith.index_cast %61 : i32 to index
    %63 = memref.load %arg2[%62] : memref<34xi32, #tpu.memory_space<smem>>
    %c6_i32_27 = arith.constant 6 : i32
    %64 = arith.addi %3, %c6_i32_27 : i32
    %c1_i32_28 = arith.constant 1 : i32
    %65 = arith.addi %64, %c1_i32_28 : i32
    %66 = arith.index_cast %65 : i32 to index
    %67 = memref.load %arg2[%66] : memref<34xi32, #tpu.memory_space<smem>>
    %c0_i32_29 = arith.constant 0 : i32
    %68 = arith.subi %67, %63 : i32
    %69 = arith.addi %63, %68 : i32
    %c1_i32_30 = arith.constant 1 : i32
    scf.for %arg6 = %63 to %69 step %c1_i32_30  : i32 {
      %151 = arith.addi %4, %arg6 : i32
      %152 = arith.index_cast %151 : i32 to index
      %153 = memref.load %arg3[%152] : memref<64xi32, #tpu.memory_space<smem>>
      %154 = arith.subi %153, %0 : i32
      %c0_67 = arith.constant 0 : index
      %155 = arith.index_cast %arg6 : i32 to index
      %c0_68 = arith.constant 0 : index
      %156 = vector.load %arg4[%c0_67, %155, %c0_68] : memref<1x32x8xf32, #tpu.memory_space<vmem>>, vector<1x1x8xf32>
      %157 = vector.shape_cast %156 : vector<1x1x8xf32> to vector<1x8xf32>
      %c0_69 = arith.constant 0 : index
      %158 = arith.index_cast %154 : i32 to index
      %c48 = arith.constant 48 : index
      %159 = vector.load %arg5[%c0_69, %158, %c48] : memref<1x16x128xf32, #tpu.memory_space<vmem>>, vector<1x1x8xf32>
      %160 = vector.shape_cast %159 : vector<1x1x8xf32> to vector<1x8xf32>
      %161 = vector.shape_cast %157 : vector<1x8xf32> to vector<1x1x8xf32>
      tpu.vector_store %arg5[%c0_69, %158, %c48], %161 {strides = array<i32>} : memref<1x16x128xf32, #tpu.memory_space<vmem>>, vector<1x1x8xf32>,
    }
    %c7_i32 = arith.constant 7 : i32
    %70 = arith.addi %3, %c7_i32 : i32
    %71 = arith.index_cast %70 : i32 to index
    %72 = memref.load %arg2[%71] : memref<34xi32, #tpu.memory_space<smem>>
    %c7_i32_31 = arith.constant 7 : i32
    %73 = arith.addi %3, %c7_i32_31 : i32
    %c1_i32_32 = arith.constant 1 : i32
    %74 = arith.addi %73, %c1_i32_32 : i32
    %75 = arith.index_cast %74 : i32 to index
    %76 = memref.load %arg2[%75] : memref<34xi32, #tpu.memory_space<smem>>
    %c0_i32_33 = arith.constant 0 : i32
    %77 = arith.subi %76, %72 : i32
    %78 = arith.addi %72, %77 : i32
    %c1_i32_34 = arith.constant 1 : i32
    scf.for %arg6 = %72 to %78 step %c1_i32_34  : i32 {
      %151 = arith.addi %4, %arg6 : i32
      %152 = arith.index_cast %151 : i32 to index
      %153 = memref.load %arg3[%152] : memref<64xi32, #tpu.memory_space<smem>>
      %154 = arith.subi %153, %0 : i32
      %c0_67 = arith.constant 0 : index
      %155 = arith.index_cast %arg6 : i32 to index
      %c0_68 = arith.constant 0 : index
      %156 = vector.load %arg4[%c0_67, %155, %c0_68] : memref<1x32x8xf32, #tpu.memory_space<vmem>>, vector<1x1x8xf32>
      %157 = vector.shape_cast %156 : vector<1x1x8xf32> to vector<1x8xf32>
      %c0_69 = arith.constant 0 : index
      %158 = arith.index_cast %154 : i32 to index
      %c56 = arith.constant 56 : index
      %159 = vector.load %arg5[%c0_69, %158, %c56] : memref<1x16x128xf32, #tpu.memory_space<vmem>>, vector<1x1x8xf32>
      %160 = vector.shape_cast %159 : vector<1x1x8xf32> to vector<1x8xf32>
      %161 = vector.shape_cast %157 : vector<1x8xf32> to vector<1x1x8xf32>
      tpu.vector_store %arg5[%c0_69, %158, %c56], %161 {strides = array<i32>} : memref<1x16x128xf32, #tpu.memory_space<vmem>>, vector<1x1x8xf32>,
    }
    %c8_i32 = arith.constant 8 : i32
    %79 = arith.addi %3, %c8_i32 : i32
    %80 = arith.index_cast %79 : i32 to index
    %81 = memref.load %arg2[%80] : memref<34xi32, #tpu.memory_space<smem>>
    %c8_i32_35 = arith.constant 8 : i32
    %82 = arith.addi %3, %c8_i32_35 : i32
    %c1_i32_36 = arith.constant 1 : i32
    %83 = arith.addi %82, %c1_i32_36 : i32
    %84 = arith.index_cast %83 : i32 to index
    %85 = memref.load %arg2[%84] : memref<34xi32, #tpu.memory_space<smem>>
    %c0_i32_37 = arith.constant 0 : i32
    %86 = arith.subi %85, %81 : i32
    %87 = arith.addi %81, %86 : i32
    %c1_i32_38 = arith.constant 1 : i32
    scf.for %arg6 = %81 to %87 step %c1_i32_38  : i32 {
      %151 = arith.addi %4, %arg6 : i32
      %152 = arith.index_cast %151 : i32 to index
      %153 = memref.load %arg3[%152] : memref<64xi32, #tpu.memory_space<smem>>
      %154 = arith.subi %153, %0 : i32
      %c0_67 = arith.constant 0 : index
      %155 = arith.index_cast %arg6 : i32 to index
      %c0_68 = arith.constant 0 : index
      %156 = vector.load %arg4[%c0_67, %155, %c0_68] : memref<1x32x8xf32, #tpu.memory_space<vmem>>, vector<1x1x8xf32>
      %157 = vector.shape_cast %156 : vector<1x1x8xf32> to vector<1x8xf32>
      %c0_69 = arith.constant 0 : index
      %158 = arith.index_cast %154 : i32 to index
      %c64 = arith.constant 64 : index
      %159 = vector.load %arg5[%c0_69, %158, %c64] : memref<1x16x128xf32, #tpu.memory_space<vmem>>, vector<1x1x8xf32>
      %160 = vector.shape_cast %159 : vector<1x1x8xf32> to vector<1x8xf32>
      %161 = vector.shape_cast %157 : vector<1x8xf32> to vector<1x1x8xf32>
      tpu.vector_store %arg5[%c0_69, %158, %c64], %161 {strides = array<i32>} : memref<1x16x128xf32, #tpu.memory_space<vmem>>, vector<1x1x8xf32>,
    }
    %c9_i32 = arith.constant 9 : i32
    %88 = arith.addi %3, %c9_i32 : i32
    %89 = arith.index_cast %88 : i32 to index
    %90 = memref.load %arg2[%89] : memref<34xi32, #tpu.memory_space<smem>>
    %c9_i32_39 = arith.constant 9 : i32
    %91 = arith.addi %3, %c9_i32_39 : i32
    %c1_i32_40 = arith.constant 1 : i32
    %92 = arith.addi %91, %c1_i32_40 : i32
    %93 = arith.index_cast %92 : i32 to index
    %94 = memref.load %arg2[%93] : memref<34xi32, #tpu.memory_space<smem>>
    %c0_i32_41 = arith.constant 0 : i32
    %95 = arith.subi %94, %90 : i32
    %96 = arith.addi %90, %95 : i32
    %c1_i32_42 = arith.constant 1 : i32
    scf.for %arg6 = %90 to %96 step %c1_i32_42  : i32 {
      %151 = arith.addi %4, %arg6 : i32
      %152 = arith.index_cast %151 : i32 to index
      %153 = memref.load %arg3[%152] : memref<64xi32, #tpu.memory_space<smem>>
      %154 = arith.subi %153, %0 : i32
      %c0_67 = arith.constant 0 : index
      %155 = arith.index_cast %arg6 : i32 to index
      %c0_68 = arith.constant 0 : index
      %156 = vector.load %arg4[%c0_67, %155, %c0_68] : memref<1x32x8xf32, #tpu.memory_space<vmem>>, vector<1x1x8xf32>
      %157 = vector.shape_cast %156 : vector<1x1x8xf32> to vector<1x8xf32>
      %c0_69 = arith.constant 0 : index
      %158 = arith.index_cast %154 : i32 to index
      %c72 = arith.constant 72 : index
      %159 = vector.load %arg5[%c0_69, %158, %c72] : memref<1x16x128xf32, #tpu.memory_space<vmem>>, vector<1x1x8xf32>
      %160 = vector.shape_cast %159 : vector<1x1x8xf32> to vector<1x8xf32>
      %161 = vector.shape_cast %157 : vector<1x8xf32> to vector<1x1x8xf32>
      tpu.vector_store %arg5[%c0_69, %158, %c72], %161 {strides = array<i32>} : memref<1x16x128xf32, #tpu.memory_space<vmem>>, vector<1x1x8xf32>,
    }
    %c10_i32 = arith.constant 10 : i32
    %97 = arith.addi %3, %c10_i32 : i32
    %98 = arith.index_cast %97 : i32 to index
    %99 = memref.load %arg2[%98] : memref<34xi32, #tpu.memory_space<smem>>
    %c10_i32_43 = arith.constant 10 : i32
    %100 = arith.addi %3, %c10_i32_43 : i32
    %c1_i32_44 = arith.constant 1 : i32
    %101 = arith.addi %100, %c1_i32_44 : i32
    %102 = arith.index_cast %101 : i32 to index
    %103 = memref.load %arg2[%102] : memref<34xi32, #tpu.memory_space<smem>>
    %c0_i32_45 = arith.constant 0 : i32
    %104 = arith.subi %103, %99 : i32
    %105 = arith.addi %99, %104 : i32
    %c1_i32_46 = arith.constant 1 : i32
    scf.for %arg6 = %99 to %105 step %c1_i32_46  : i32 {
      %151 = arith.addi %4, %arg6 : i32
      %152 = arith.index_cast %151 : i32 to index
      %153 = memref.load %arg3[%152] : memref<64xi32, #tpu.memory_space<smem>>
      %154 = arith.subi %153, %0 : i32
      %c0_67 = arith.constant 0 : index
      %155 = arith.index_cast %arg6 : i32 to index
      %c0_68 = arith.constant 0 : index
      %156 = vector.load %arg4[%c0_67, %155, %c0_68] : memref<1x32x8xf32, #tpu.memory_space<vmem>>, vector<1x1x8xf32>
      %157 = vector.shape_cast %156 : vector<1x1x8xf32> to vector<1x8xf32>
      %c0_69 = arith.constant 0 : index
      %158 = arith.index_cast %154 : i32 to index
      %c80 = arith.constant 80 : index
      %159 = vector.load %arg5[%c0_69, %158, %c80] : memref<1x16x128xf32, #tpu.memory_space<vmem>>, vector<1x1x8xf32>
      %160 = vector.shape_cast %159 : vector<1x1x8xf32> to vector<1x8xf32>
      %161 = vector.shape_cast %157 : vector<1x8xf32> to vector<1x1x8xf32>
      tpu.vector_store %arg5[%c0_69, %158, %c80], %161 {strides = array<i32>} : memref<1x16x128xf32, #tpu.memory_space<vmem>>, vector<1x1x8xf32>,
    }
    %c11_i32 = arith.constant 11 : i32
    %106 = arith.addi %3, %c11_i32 : i32
    %107 = arith.index_cast %106 : i32 to index
    %108 = memref.load %arg2[%107] : memref<34xi32, #tpu.memory_space<smem>>
    %c11_i32_47 = arith.constant 11 : i32
    %109 = arith.addi %3, %c11_i32_47 : i32
    %c1_i32_48 = arith.constant 1 : i32
    %110 = arith.addi %109, %c1_i32_48 : i32
    %111 = arith.index_cast %110 : i32 to index
    %112 = memref.load %arg2[%111] : memref<34xi32, #tpu.memory_space<smem>>
    %c0_i32_49 = arith.constant 0 : i32
    %113 = arith.subi %112, %108 : i32
    %114 = arith.addi %108, %113 : i32
    %c1_i32_50 = arith.constant 1 : i32
    scf.for %arg6 = %108 to %114 step %c1_i32_50  : i32 {
      %151 = arith.addi %4, %arg6 : i32
      %152 = arith.index_cast %151 : i32 to index
      %153 = memref.load %arg3[%152] : memref<64xi32, #tpu.memory_space<smem>>
      %154 = arith.subi %153, %0 : i32
      %c0_67 = arith.constant 0 : index
      %155 = arith.index_cast %arg6 : i32 to index
      %c0_68 = arith.constant 0 : index
      %156 = vector.load %arg4[%c0_67, %155, %c0_68] : memref<1x32x8xf32, #tpu.memory_space<vmem>>, vector<1x1x8xf32>
      %157 = vector.shape_cast %156 : vector<1x1x8xf32> to vector<1x8xf32>
      %c0_69 = arith.constant 0 : index
      %158 = arith.index_cast %154 : i32 to index
      %c88 = arith.constant 88 : index
      %159 = vector.load %arg5[%c0_69, %158, %c88] : memref<1x16x128xf32, #tpu.memory_space<vmem>>, vector<1x1x8xf32>
      %160 = vector.shape_cast %159 : vector<1x1x8xf32> to vector<1x8xf32>
      %161 = vector.shape_cast %157 : vector<1x8xf32> to vector<1x1x8xf32>
      tpu.vector_store %arg5[%c0_69, %158, %c88], %161 {strides = array<i32>} : memref<1x16x128xf32, #tpu.memory_space<vmem>>, vector<1x1x8xf32>,
    }
    %c12_i32 = arith.constant 12 : i32
    %115 = arith.addi %3, %c12_i32 : i32
    %116 = arith.index_cast %115 : i32 to index
    %117 = memref.load %arg2[%116] : memref<34xi32, #tpu.memory_space<smem>>
    %c12_i32_51 = arith.constant 12 : i32
    %118 = arith.addi %3, %c12_i32_51 : i32
    %c1_i32_52 = arith.constant 1 : i32
    %119 = arith.addi %118, %c1_i32_52 : i32
    %120 = arith.index_cast %119 : i32 to index
    %121 = memref.load %arg2[%120] : memref<34xi32, #tpu.memory_space<smem>>
    %c0_i32_53 = arith.constant 0 : i32
    %122 = arith.subi %121, %117 : i32
    %123 = arith.addi %117, %122 : i32
    %c1_i32_54 = arith.constant 1 : i32
    scf.for %arg6 = %117 to %123 step %c1_i32_54  : i32 {
      %151 = arith.addi %4, %arg6 : i32
      %152 = arith.index_cast %151 : i32 to index
      %153 = memref.load %arg3[%152] : memref<64xi32, #tpu.memory_space<smem>>
      %154 = arith.subi %153, %0 : i32
      %c0_67 = arith.constant 0 : index
      %155 = arith.index_cast %arg6 : i32 to index
      %c0_68 = arith.constant 0 : index
      %156 = vector.load %arg4[%c0_67, %155, %c0_68] : memref<1x32x8xf32, #tpu.memory_space<vmem>>, vector<1x1x8xf32>
      %157 = vector.shape_cast %156 : vector<1x1x8xf32> to vector<1x8xf32>
      %c0_69 = arith.constant 0 : index
      %158 = arith.index_cast %154 : i32 to index
      %c96 = arith.constant 96 : index
      %159 = vector.load %arg5[%c0_69, %158, %c96] : memref<1x16x128xf32, #tpu.memory_space<vmem>>, vector<1x1x8xf32>
      %160 = vector.shape_cast %159 : vector<1x1x8xf32> to vector<1x8xf32>
      %161 = vector.shape_cast %157 : vector<1x8xf32> to vector<1x1x8xf32>
      tpu.vector_store %arg5[%c0_69, %158, %c96], %161 {strides = array<i32>} : memref<1x16x128xf32, #tpu.memory_space<vmem>>, vector<1x1x8xf32>,
    }
    %c13_i32 = arith.constant 13 : i32
    %124 = arith.addi %3, %c13_i32 : i32
    %125 = arith.index_cast %124 : i32 to index
    %126 = memref.load %arg2[%125] : memref<34xi32, #tpu.memory_space<smem>>
    %c13_i32_55 = arith.constant 13 : i32
    %127 = arith.addi %3, %c13_i32_55 : i32
    %c1_i32_56 = arith.constant 1 : i32
    %128 = arith.addi %127, %c1_i32_56 : i32
    %129 = arith.index_cast %128 : i32 to index
    %130 = memref.load %arg2[%129] : memref<34xi32, #tpu.memory_space<smem>>
    %c0_i32_57 = arith.constant 0 : i32
    %131 = arith.subi %130, %126 : i32
    %132 = arith.addi %126, %131 : i32
    %c1_i32_58 = arith.constant 1 : i32
    scf.for %arg6 = %126 to %132 step %c1_i32_58  : i32 {
      %151 = arith.addi %4, %arg6 : i32
      %152 = arith.index_cast %151 : i32 to index
      %153 = memref.load %arg3[%152] : memref<64xi32, #tpu.memory_space<smem>>
      %154 = arith.subi %153, %0 : i32
      %c0_67 = arith.constant 0 : index
      %155 = arith.index_cast %arg6 : i32 to index
      %c0_68 = arith.constant 0 : index
      %156 = vector.load %arg4[%c0_67, %155, %c0_68] : memref<1x32x8xf32, #tpu.memory_space<vmem>>, vector<1x1x8xf32>
      %157 = vector.shape_cast %156 : vector<1x1x8xf32> to vector<1x8xf32>
      %c0_69 = arith.constant 0 : index
      %158 = arith.index_cast %154 : i32 to index
      %c104 = arith.constant 104 : index
      %159 = vector.load %arg5[%c0_69, %158, %c104] : memref<1x16x128xf32, #tpu.memory_space<vmem>>, vector<1x1x8xf32>
      %160 = vector.shape_cast %159 : vector<1x1x8xf32> to vector<1x8xf32>
      %161 = vector.shape_cast %157 : vector<1x8xf32> to vector<1x1x8xf32>
      tpu.vector_store %arg5[%c0_69, %158, %c104], %161 {strides = array<i32>} : memref<1x16x128xf32, #tpu.memory_space<vmem>>, vector<1x1x8xf32>,
    }
    %c14_i32 = arith.constant 14 : i32
    %133 = arith.addi %3, %c14_i32 : i32
    %134 = arith.index_cast %133 : i32 to index
    %135 = memref.load %arg2[%134] : memref<34xi32, #tpu.memory_space<smem>>
    %c14_i32_59 = arith.constant 14 : i32
    %136 = arith.addi %3, %c14_i32_59 : i32
    %c1_i32_60 = arith.constant 1 : i32
    %137 = arith.addi %136, %c1_i32_60 : i32
    %138 = arith.index_cast %137 : i32 to index
    %139 = memref.load %arg2[%138] : memref<34xi32, #tpu.memory_space<smem>>
    %c0_i32_61 = arith.constant 0 : i32
    %140 = arith.subi %139, %135 : i32
    %141 = arith.addi %135, %140 : i32
    %c1_i32_62 = arith.constant 1 : i32
    scf.for %arg6 = %135 to %141 step %c1_i32_62  : i32 {
      %151 = arith.addi %4, %arg6 : i32
      %152 = arith.index_cast %151 : i32 to index
      %153 = memref.load %arg3[%152] : memref<64xi32, #tpu.memory_space<smem>>
      %154 = arith.subi %153, %0 : i32
      %c0_67 = arith.constant 0 : index
      %155 = arith.index_cast %arg6 : i32 to index
      %c0_68 = arith.constant 0 : index
      %156 = vector.load %arg4[%c0_67, %155, %c0_68] : memref<1x32x8xf32, #tpu.memory_space<vmem>>, vector<1x1x8xf32>
      %157 = vector.shape_cast %156 : vector<1x1x8xf32> to vector<1x8xf32>
      %c0_69 = arith.constant 0 : index
      %158 = arith.index_cast %154 : i32 to index
      %c112 = arith.constant 112 : index
      %159 = vector.load %arg5[%c0_69, %158, %c112] : memref<1x16x128xf32, #tpu.memory_space<vmem>>, vector<1x1x8xf32>
      %160 = vector.shape_cast %159 : vector<1x1x8xf32> to vector<1x8xf32>
      %161 = vector.shape_cast %157 : vector<1x8xf32> to vector<1x1x8xf32>
      tpu.vector_store %arg5[%c0_69, %158, %c112], %161 {strides = array<i32>} : memref<1x16x128xf32, #tpu.memory_space<vmem>>, vector<1x1x8xf32>,
    }
    %c15_i32 = arith.constant 15 : i32
    %142 = arith.addi %3, %c15_i32 : i32
    %143 = arith.index_cast %142 : i32 to index
    %144 = memref.load %arg2[%143] : memref<34xi32, #tpu.memory_space<smem>>
    %c15_i32_63 = arith.constant 15 : i32
    %145 = arith.addi %3, %c15_i32_63 : i32
    %c1_i32_64 = arith.constant 1 : i32
    %146 = arith.addi %145, %c1_i32_64 : i32
    %147 = arith.index_cast %146 : i32 to index
    %148 = memref.load %arg2[%147] : memref<34xi32, #tpu.memory_space<smem>>
    %c0_i32_65 = arith.constant 0 : i32
    %149 = arith.subi %148, %144 : i32
    %150 = arith.addi %144, %149 : i32
    %c1_i32_66 = arith.constant 1 : i32
    scf.for %arg6 = %144 to %150 step %c1_i32_66  : i32 {
      %151 = arith.addi %4, %arg6 : i32
      %152 = arith.index_cast %151 : i32 to index
      %153 = memref.load %arg3[%152] : memref<64xi32, #tpu.memory_space<smem>>
      %154 = arith.subi %153, %0 : i32
      %c0_67 = arith.constant 0 : index
      %155 = arith.index_cast %arg6 : i32 to index
      %c0_68 = arith.constant 0 : index
      %156 = vector.load %arg4[%c0_67, %155, %c0_68] : memref<1x32x8xf32, #tpu.memory_space<vmem>>, vector<1x1x8xf32>
      %157 = vector.shape_cast %156 : vector<1x1x8xf32> to vector<1x8xf32>
      %c0_69 = arith.constant 0 : index
      %158 = arith.index_cast %154 : i32 to index
      %c120 = arith.constant 120 : index
      %159 = vector.load %arg5[%c0_69, %158, %c120] : memref<1x16x128xf32, #tpu.memory_space<vmem>>, vector<1x1x8xf32>
      %160 = vector.shape_cast %159 : vector<1x1x8xf32> to vector<1x8xf32>
      %161 = vector.shape_cast %157 : vector<1x8xf32> to vector<1x1x8xf32>
      tpu.vector_store %arg5[%c0_69, %158, %c120], %161 {strides = array<i32>} : memref<1x16x128xf32, #tpu.memory_space<vmem>>, vector<1x1x8xf32>,
    }
    return
  }
  func.func @transform_0(%arg0: i32, %arg1: i32, %arg2: memref<34xi32, #tpu.memory_space<smem>>, %arg3: memref<64xi32, #tpu.memory_space<smem>>) -> (i32, i32, i32) {
    %c0_i32 = arith.constant 0 : i32
    %c0_i32_0 = arith.constant 0 : i32
    %c0_i32_1 = arith.constant 0 : i32
    return %arg0, %c0_i32, %c0_i32_0 : i32, i32, i32
  }
  func.func @transform_1(%arg0: i32, %arg1: i32, %arg2: memref<34xi32, #tpu.memory_space<smem>>, %arg3: memref<64xi32, #tpu.memory_space<smem>>) -> (i32, i32, i32) {
    %c0_i32 = arith.constant 0 : i32
    %c0_i32_0 = arith.constant 0 : i32
    return %arg0, %arg1, %c0_i32 : i32, i32, i32
  }
}

</mosaic_0001>

<bundles_post_ra>
// kernel: tpu_custom_call.1
= control target key start
LH: loop header
LB: loop body
LE: loop exit
PB: predicated region body
PF: predicated region fallthrough
CT: control target
= control target key end

     0   :  { %s1378_s0 = inlined_call_operand.vmem [shape: s32[34], index: 0, kind: input, shape index: {}]   ;;  %s1379_s2 = inlined_call_operand.vmem [shape: f32[2,32,8], index: 2, kind: input, shape index: {}]   ;;  %s1380_s3 = inlined_call_operand.hbm [shape: f32[2,16,128], index: 3, kind: output, shape index: {}]   ;;  %s1381_s1 = inlined_call_operand.vmem [shape: s32[64], index: 1, kind: input, shape index: {}]  }
   0x1   :  { %s8_s14 = sshll.u32 %s1378_s0, 4  ;;  %s12_s17 = sshll.u32 %s1381_s1, 4  ;;  %s9_s14 = int_to_ptr.vmem [resolvable:$true] %s8_s14  ;;  %s13_s17 = int_to_ptr.vmem [resolvable:$true] %s12_s17 }
   0x2   :  { %s900_s18 = scalar_lea.vmem %s9_s14, 16  ;;  %p905_p1 = scmp.lt.s32.totalorder %s9_s14, %s9_s14 }
   0x3   :  { %p901_p0 = scmp.ne.s32.totalorder %s9_s14, %s900_s18  ;;  %p906_p2 = scmp.lt.s32.totalorder %s900_s18, %s900_s18 }
   0x5   :  { %p907_p3 = por %p906_p2, %p905_p1 }
   0x7   :  { %p908_p4 = pnand %p907_p3, %p901_p0 }
   0x9   :  { %911 = shalt.err (!%p908_p4)  }
   0xa   :  { %s1134_s19 = smov [#allocation3]   ;;  %s912_s20 = scalar_lea.vmem %s13_s17, 16 }
   0xb   :  { %11 = dma.vmem_to_smem %s9_s14, 16, %s1134_s19, [#allocation2] }
   0xc   :  { %p913_p5 = scmp.ne.s32.totalorder %s13_s17, %s912_s20  ;;  %p917_p6 = scmp.lt.s32.totalorder %s13_s17, %s13_s17 }
   0xd   :  { %p918_p7 = scmp.lt.s32.totalorder %s912_s20, %s912_s20 }
   0xf   :  { %p919_p8 = por %p918_p7, %p917_p6 }
  0x11   :  { %p920_p9 = pnand %p919_p8, %p913_p5 }
  0x13   :  { %923 = shalt.err (!%p920_p9)  }
  0x14   :  { %s1135_s0 = smov [#allocation4]  }
  0x15   :  { %15 = dma.vmem_to_smem %s13_s17, 16, %s1135_s0, [#allocation2] }
  0x16   :  { %1040 = dma.done.wait [#allocation2], 32 }
  0x17   :  { %1041 = vsyncadd [#allocation2], 4294967264 }
  0x18   :  { %17 = sfence }
  0x19   :  { %18 = vsyncpa [#allocation6], 0 }
  0x1a   :  { %20 = vsyncpa [#allocation6 + $0x1], 0  ;;  %s1181_s1 = smov 0   ;;  %s1183_s21 = smov 0  }
  0x1b   :  { %s1185_s22 = smov 0   ;;  %s1187_s23 = smov 0  }
  0x1c   :  { %s1189_s24 = smov 0   ;;  %s1191_s25 = smov 0  }
  0x1d LB: > { %s681_s26 = sadd.s32 4294967295, %s1068_s25   ;;  %s682_s27 = sadd.s32 4294967294, %s1068_s25   ;;  %s1068_s25 = sphi %s1191_s25, %s26_s25   ;;  %s1064_s24 = sphi %s1189_s24, %s1388_s24   ;;  %s1060_s23 = sphi %s1187_s23, %s1387_s23   ;;  %s1056_s22 = sphi %s1185_s22, %s1386_s22   ;;  %s1052_s21 = sphi %s1183_s21, %s1385_s21   ;;  %s1048_s1 = sphi %s1181_s1, %s1384_s1  }
  0x1e   : > { %s38_s28 = sadd.s32 1, %s1064_s24  ;;  %s73_s29 = sadd.s32 1, %s1056_s22 }
  0x1f   : > { %p40_p10 = scmp.ge.s32.totalorder %s38_s28, 2  ;;  %p83_p11 = scmp.ne.s32.totalorder %s1056_s22, %s1052_s21 }
  0x20   : > { %p84_p12 = scmp.eq.s32.totalorder %s681_s26, 1  ;;  %p89_p13 = scmp.ne.s32.totalorder %s1052_s21, %s1048_s1 }
  0x21   : > { %s1390_s28 = smov (%p40_p10, %s38_s28), 0  ;;  %p90_p1 = scmp.eq.s32.totalorder %s682_s27, 1 }
  0x22   : > { %p1221_p0 = por %p84_p12, %p83_p11  ;;  %s68_s4 = ssub.s32 %s1064_s24, %s1390_s28 }
  0x23   : > { %p685_p2 = scmp.ge.s32.totalorder %s1068_s25, 1  ;;  %p71_p3 = scmp.eq.s32.totalorder %s68_s4, 0 }
  0x24   : > { %p1228_p4 = por %p90_p1, %p89_p13  ;;  %p116_p5 = scmp.lt.s32.totalorder %s1068_s25, 3 }
  0x25   : > { %s1234_s6 = scalar_select %p71_p3, %s1056_s22, %s73_s29  }
  0x26   : > { %p117_p6 = pnand %p685_p2, %p116_p5 }
  0x27   : > { %s133_s7 = sand.u32 (!%p117_p6), 1, %s1052_s21   ;;  %p136_p7 = scmp.lt.s32.totalorder (!%p117_p6), %s1060_s23, 1  ;;  %v1136_v0 = vmov (!%p117_p6), 0.0  }
  0x28   : > { %120 = sbr.rel (%p117_p6) target bundleno = 2105 (0x839), region = 24  ;;  %s686_s8 = sshll.u32 (!%p117_p6), %s133_s7, 4 }
  0x29   : > { %s1241_s9 = smul.u32 (!%p117_p6), 17, %s1060_s23  ;;  %s1244_s10 = sshll.u32 (!%p117_p6), %s1060_s23, 5 }
  0x2a   : > { %s1247_s12 = scalar_lea.vmem (!%p117_p6), [#allocation5], %s686_s8 }
  0x2b   : > { %146 = vst [vmem:[%s1247_s12] sm:$0xff] (!%p117_p6), %v1136_v0  ;;  %147 = vst [vmem:[%s1247_s12 + $0x8] sm:$0xff] (!%p117_p6), %v1136_v0  ;;  %s148_s13 = sld [smem:[#allocation3 + %s1241_s9]] (!%p117_p6)   ;;  %s149_s14 = sadd.s32 (!%p117_p6), 1, %s1241_s9 }
  0x2c   : > { %s150_s16 = sld [smem:[#allocation3 + %s149_s14]] (!%p117_p6) }
  0x2f   : > { %s137_s11 = scalar_select %p136_p7, %s1060_s23, 1 }
  0x31   : > { %s695_s15 = sshll.u32 %s137_s11, 5 }
  0x32   : > { %s1256_s19 = scalar_lea.vmem %s1379_s2, %s695_s15  ;;  %p573_p8 = scmp.ge.s32.totalorder %s148_s13, %s150_s16 }
  0x33   : > { %s1070_s20 = smov (!%p573_p8), %s148_s13  }
  0x34   : > { %574 = sbr.rel (%p573_p8) target bundleno = 70 (0x46), region = 197 }
  0x3b LB: >> { %s157_s0 = sadd.s32 %s1072_s20, %s1244_s10  ;;  %s160_s27 = scalar_lea.vmem %s1256_s19, %s1072_s20  ;;  %vm163_vm0 = vcmask 57344   ;;  %s1072_s20 = sphi %s1070_s20, %s154_s20  }
  0x3c   : >> { %s158_s26 = sld [smem:[#allocation4 + %s157_s0]]  ;;  %v161_v1 = vld [vmem:[%s160_s27] sm:$0x1]  ;;  %s154_s20 = sadd.s32 1, %s1072_s20  }
  0x3d   : >> { %p153_p9 = scmp.ge.s32.totalorder %s154_s20, %s150_s16 }
  0x3f   : > { %156 = sbr.rel (!%p153_p9) target bundleno = 59 (0x3b), region = 203 }
  0x42   : >> { %s162_s29 = scalar_lea.vmem %s1247_s12, %s158_s26 [#allocation5] }
  0x43   : >> { %164 = vst.msk [vmem:[%s162_s29] sm:$0x1] %vm163_vm0, %v161_v1 }
  0x46 PF: > { %s165_s4 = sld [smem:[#allocation3 + %s149_s14]]   ;;  %s166_s8 = sadd.s32 2, %s1241_s9 }
  0x47   : > { %s167_s11 = sld [smem:[#allocation3 + %s166_s8]] }
  0x4d   : > { %p578_p10 = scmp.ge.s32.totalorder %s165_s4, %s167_s11 }
  0x4e   : > { %s1074_s13 = smov (!%p578_p10), %s165_s4  }
  0x4f   : > { %579 = sbr.rel (%p578_p10) target bundleno = 204 (0xcc), region = 208 }
  0x56 LB: >> { %s177_s15 = scalar_lea.vmem %s1256_s19, %s1076_s13  ;;  %s1137_s17 = smov 8   ;;  %vm184_vm1 = vcmask 122944   ;;  %s1076_s13 = sphi %s1074_s13, %s171_s13  }
  0x57   : >> { %v178_v2 = vld [vmem:[%s177_s15] sm:$0x1]  ;;  %s174_s18 = sadd.s32 %s1076_s13, %s1244_s10  ;;  %s171_s13 = sadd.s32 1, %s1076_s13  }
  0x58   : >> { %180 = vrot.lane.b32.xlu0 %v178_v2, %s1137_s17  ;;  %s175_s20 = sld [smem:[#allocation4 + %s174_s18]]  ;;  %p170_p11 = scmp.ge.s32.totalorder %s171_s13, %s167_s11 }
  0x5e   : >> { %s183_s16 = scalar_lea.vmem %s1247_s12, %s175_s20 [#allocation5] }
  0xc5   : > { %173 = sbr.rel (!%p170_p11) target bundleno = 86 (0x56), region = 214 }
  0xca   : >> { %v181_v3 = vpop.permute.xlu0 %180 }
  0xcb   : >> { %185 = vst.msk [vmem:[%s183_s16] sm:$0x1] %vm184_vm1, %v181_v3 }
  0xcc PF: > { %s186_s14 = sld [smem:[#allocation3 + %s166_s8]]   ;;  %s187_s0 = sadd.s32 3, %s1241_s9 }
  0xcd   : > { %s188_s26 = sld [smem:[#allocation3 + %s187_s0]] }
  0xd3   : > { %p583_p12 = scmp.ge.s32.totalorder %s186_s14, %s188_s26 }
  0xd4   : > { %s1078_s27 = smov (!%p583_p12), %s186_s14  }
  0xd5   : > { %584 = sbr.rel (%p583_p12) target bundleno = 338 (0x152), region = 219 }
  0xdc LB: >> { %s198_s29 = scalar_lea.vmem %s1256_s19, %s1080_s27  ;;  %s1138_s4 = smov 16   ;;  %vm205_vm2 = vcmask 188544   ;;  %s1080_s27 = sphi %s1078_s27, %s192_s27  }
  0xdd   : >> { %v199_v4 = vld [vmem:[%s198_s29] sm:$0x1]  ;;  %s195_s13 = sadd.s32 %s1080_s27, %s1244_s10  ;;  %s192_s27 = sadd.s32 1, %s1080_s27  }
  0xde   : >> { %201 = vrot.lane.b32.xlu0 %v199_v4, %s1138_s4  ;;  %s196_s15 = sld [smem:[#allocation4 + %s195_s13]]  ;;  %p191_p13 = scmp.ge.s32.totalorder %s192_s27, %s188_s26 }
  0xe4   : >> { %s204_s11 = scalar_lea.vmem %s1247_s12, %s196_s15 [#allocation5] }
 0x14b   : > { %194 = sbr.rel (!%p191_p13) target bundleno = 220 (0xdc), region = 225 }
 0x150   : >> { %v202_v5 = vpop.permute.xlu0 %201 }
 0x151   : >> { %206 = vst.msk [vmem:[%s204_s11] sm:$0x1] %vm205_vm2, %v202_v5 }
 0x152 PF: > { %s207_s8 = sld [smem:[#allocation3 + %s187_s0]]   ;;  %s208_s17 = sadd.s32 4, %s1241_s9 }
 0x153   : > { %s209_s18 = sld [smem:[#allocation3 + %s208_s17]] }
 0x159   : > { %p588_p1 = scmp.ge.s32.totalorder %s207_s8, %s209_s18 }
 0x15a   : > { %s1082_s20 = smov (!%p588_p1), %s207_s8  }
 0x15b   : > { %589 = sbr.rel (%p588_p1) target bundleno = 472 (0x1d8), region = 230 }
 0x162 LB: >> { %s219_s16 = scalar_lea.vmem %s1256_s19, %s1084_s20  ;;  %s1139_s14 = smov 24   ;;  %vm226_vm3 = vcmask 254144   ;;  %s1084_s20 = sphi %s1082_s20, %s213_s20  }
 0x163   : >> { %v220_v6 = vld [vmem:[%s219_s16] sm:$0x1]  ;;  %s216_s27 = sadd.s32 %s1084_s20, %s1244_s10  ;;  %s213_s20 = sadd.s32 1, %s1084_s20  }
 0x164   : >> { %222 = vrot.lane.b32.xlu0 %v220_v6, %s1139_s14  ;;  %s217_s29 = sld [smem:[#allocation4 + %s216_s27]]  ;;  %p212_p2 = scmp.ge.s32.totalorder %s213_s20, %s209_s18 }
 0x16a   : >> { %s225_s26 = scalar_lea.vmem %s1247_s12, %s217_s29 [#allocation5] }
 0x1d1   : > { %215 = sbr.rel (!%p212_p2) target bundleno = 354 (0x162), region = 236 }
 0x1d6   : >> { %v223_v7 = vpop.permute.xlu0 %222 }
 0x1d7   : >> { %227 = vst.msk [vmem:[%s225_s26] sm:$0x1] %vm226_vm3, %v223_v7 }
 0x1d8 PF: > { %s228_s0 = sld [smem:[#allocation3 + %s208_s17]]   ;;  %s229_s4 = sadd.s32 5, %s1241_s9 }
 0x1d9   : > { %s230_s13 = sld [smem:[#allocation3 + %s229_s4]] }
 0x1df   : > { %p593_p3 = scmp.ge.s32.totalorder %s228_s0, %s230_s13 }
 0x1e0   : > { %s1086_s15 = smov (!%p593_p3), %s228_s0  }
 0x1e1   : > { %594 = sbr.rel (%p593_p3) target bundleno = 606 (0x25e), region = 241 }
 0x1e8 LB: >> { %s240_s11 = scalar_lea.vmem %s1256_s19, %s1088_s15  ;;  %s1140_s8 = smov 32   ;;  %vm247_vm4 = vcmask 319744   ;;  %s1088_s15 = sphi %s1086_s15, %s234_s15  }
 0x1e9   : >> { %v241_v8 = vld [vmem:[%s240_s11] sm:$0x1]  ;;  %s237_s20 = sadd.s32 %s1088_s15, %s1244_s10  ;;  %s234_s15 = sadd.s32 1, %s1088_s15  }
 0x1ea   : >> { %243 = vrot.lane.b32.xlu0 %v241_v8, %s1140_s8  ;;  %s238_s16 = sld [smem:[#allocation4 + %s237_s20]]  ;;  %p233_p5 = scmp.ge.s32.totalorder %s234_s15, %s230_s13 }
 0x1f0   : >> { %s246_s18 = scalar_lea.vmem %s1247_s12, %s238_s16 [#allocation5] }
 0x257   : > { %236 = sbr.rel (!%p233_p5) target bundleno = 488 (0x1e8), region = 247 }
 0x25c   : >> { %v244_v9 = vpop.permute.xlu0 %243 }
 0x25d   : >> { %248 = vst.msk [vmem:[%s246_s18] sm:$0x1] %vm247_vm4, %v244_v9 }
 0x25e PF: > { %s249_s17 = sld [smem:[#allocation3 + %s229_s4]]   ;;  %s250_s14 = sadd.s32 6, %s1241_s9 }
 0x25f   : > { %s251_s27 = sld [smem:[#allocation3 + %s250_s14]] }
 0x265   : > { %p598_p6 = scmp.ge.s32.totalorder %s249_s17, %s251_s27 }
 0x266   : > { %s1090_s29 = smov (!%p598_p6), %s249_s17  }
 0x267   : > { %599 = sbr.rel (%p598_p6) target bundleno = 740 (0x2e4), region = 252 }
 0x26e LB: >> { %s261_s26 = scalar_lea.vmem %s1256_s19, %s1092_s29  ;;  %s1141_s0 = smov 40   ;;  %vm268_vm5 = vcmask 385344   ;;  %s1092_s29 = sphi %s1090_s29, %s255_s29  }
 0x26f   : >> { %v262_v10 = vld [vmem:[%s261_s26] sm:$0x1]  ;;  %s258_s15 = sadd.s32 %s1092_s29, %s1244_s10  ;;  %s255_s29 = sadd.s32 1, %s1092_s29  }
 0x270   : >> { %264 = vrot.lane.b32.xlu0 %v262_v10, %s1141_s0  ;;  %s259_s11 = sld [smem:[#allocation4 + %s258_s15]]  ;;  %p254_p7 = scmp.ge.s32.totalorder %s255_s29, %s251_s27 }
 0x276   : >> { %s267_s13 = scalar_lea.vmem %s1247_s12, %s259_s11 [#allocation5] }
 0x2dd   : > { %257 = sbr.rel (!%p254_p7) target bundleno = 622 (0x26e), region = 258 }
 0x2e2   : >> { %v265_v11 = vpop.permute.xlu0 %264 }
 0x2e3   : >> { %269 = vst.msk [vmem:[%s267_s13] sm:$0x1] %vm268_vm5, %v265_v11 }
 0x2e4 PF: > { %s270_s4 = sld [smem:[#allocation3 + %s250_s14]]   ;;  %s271_s8 = sadd.s32 7, %s1241_s9 }
 0x2e5   : > { %s272_s20 = sld [smem:[#allocation3 + %s271_s8]] }
 0x2eb   : > { %p603_p8 = scmp.ge.s32.totalorder %s270_s4, %s272_s20 }
 0x2ec   : > { %s1094_s16 = smov (!%p603_p8), %s270_s4  }
 0x2ed   : > { %604 = sbr.rel (%p603_p8) target bundleno = 874 (0x36a), region = 263 }
 0x2f4 LB: >> { %s282_s18 = scalar_lea.vmem %s1256_s19, %s1096_s16  ;;  %s1142_s17 = smov 48   ;;  %vm289_vm6 = vcmask 450944   ;;  %s1096_s16 = sphi %s1094_s16, %s276_s16  }
 0x2f5   : >> { %v283_v12 = vld [vmem:[%s282_s18] sm:$0x1]  ;;  %s279_s29 = sadd.s32 %s1096_s16, %s1244_s10  ;;  %s276_s16 = sadd.s32 1, %s1096_s16  }
 0x2f6   : >> { %285 = vrot.lane.b32.xlu0 %v283_v12, %s1142_s17  ;;  %s280_s26 = sld [smem:[#allocation4 + %s279_s29]]  ;;  %p275_p9 = scmp.ge.s32.totalorder %s276_s16, %s272_s20 }
 0x2fc   : >> { %s288_s27 = scalar_lea.vmem %s1247_s12, %s280_s26 [#allocation5] }
 0x363   : > { %278 = sbr.rel (!%p275_p9) target bundleno = 756 (0x2f4), region = 269 }
 0x368   : >> { %v286_v13 = vpop.permute.xlu0 %285 }
 0x369   : >> { %290 = vst.msk [vmem:[%s288_s27] sm:$0x1] %vm289_vm6, %v286_v13 }
 0x36a PF: > { %s291_s14 = sld [smem:[#allocation3 + %s271_s8]]   ;;  %s292_s0 = sadd.s32 8, %s1241_s9 }
 0x36b   : > { %s293_s15 = sld [smem:[#allocation3 + %s292_s0]] }
 0x371   : > { %p608_p10 = scmp.ge.s32.totalorder %s291_s14, %s293_s15 }
 0x372   : > { %s1098_s11 = smov (!%p608_p10), %s291_s14  }
 0x373   : > { %609 = sbr.rel (%p608_p10) target bundleno = 1008 (0x3f0), region = 274 }
 0x37a LB: >> { %s303_s13 = scalar_lea.vmem %s1256_s19, %s1100_s11  ;;  %s1143_s4 = smov 56   ;;  %vm310_vm7 = vcmask 516544   ;;  %s1100_s11 = sphi %s1098_s11, %s297_s11  }
 0x37b   : >> { %v304_v14 = vld [vmem:[%s303_s13] sm:$0x1]  ;;  %s300_s16 = sadd.s32 %s1100_s11, %s1244_s10  ;;  %s297_s11 = sadd.s32 1, %s1100_s11  }
 0x37c   : >> { %306 = vrot.lane.b32.xlu0 %v304_v14, %s1143_s4  ;;  %s301_s18 = sld [smem:[#allocation4 + %s300_s16]]  ;;  %p296_p11 = scmp.ge.s32.totalorder %s297_s11, %s293_s15 }
 0x382   : >> { %s309_s20 = scalar_lea.vmem %s1247_s12, %s301_s18 [#allocation5] }
 0x3e9   : > { %299 = sbr.rel (!%p296_p11) target bundleno = 890 (0x37a), region = 280 }
 0x3ee   : >> { %v307_v15 = vpop.permute.xlu0 %306 }
 0x3ef   : >> { %311 = vst.msk [vmem:[%s309_s20] sm:$0x1] %vm310_vm7, %v307_v15 }
 0x3f0 PF: > { %s312_s8 = sld [smem:[#allocation3 + %s292_s0]]   ;;  %s313_s17 = sadd.s32 9, %s1241_s9 }
 0x3f1   : > { %s314_s29 = sld [smem:[#allocation3 + %s313_s17]] }
 0x3f7   : > { %p613_p12 = scmp.ge.s32.totalorder %s312_s8, %s314_s29 }
 0x3f8   : > { %s1102_s26 = smov (!%p613_p12), %s312_s8  }
 0x3f9   : > { %614 = sbr.rel (%p613_p12) target bundleno = 1142 (0x476), region = 285 }
 0x400 LB: >> { %s324_s27 = scalar_lea.vmem %s1256_s19, %s1104_s26  ;;  %s1144_s14 = smov 64   ;;  %vm331_vm8 = vcmask 582144   ;;  %s1104_s26 = sphi %s1102_s26, %s318_s26  }
 0x401   : >> { %v325_v16 = vld [vmem:[%s324_s27] sm:$0x1]  ;;  %s321_s11 = sadd.s32 %s1104_s26, %s1244_s10  ;;  %s318_s26 = sadd.s32 1, %s1104_s26  }
 0x402   : >> { %327 = vrot.lane.b32.xlu0 %v325_v16, %s1144_s14  ;;  %s322_s13 = sld [smem:[#allocation4 + %s321_s11]]  ;;  %p317_p13 = scmp.ge.s32.totalorder %s318_s26, %s314_s29 }
 0x408   : >> { %s330_s15 = scalar_lea.vmem %s1247_s12, %s322_s13 [#allocation5] }
 0x46f   : > { %320 = sbr.rel (!%p317_p13) target bundleno = 1024 (0x400), region = 291 }
 0x474   : >> { %v328_v17 = vpop.permute.xlu0 %327 }
 0x475   : >> { %332 = vst.msk [vmem:[%s330_s15] sm:$0x1] %vm331_vm8, %v328_v17 }
 0x476 PF: > { %s333_s0 = sld [smem:[#allocation3 + %s313_s17]]   ;;  %s334_s4 = sadd.s32 10, %s1241_s9 }
 0x477   : > { %s335_s16 = sld [smem:[#allocation3 + %s334_s4]] }
 0x47d   : > { %p618_p1 = scmp.ge.s32.totalorder %s333_s0, %s335_s16 }
 0x47e   : > { %s1106_s18 = smov (!%p618_p1), %s333_s0  }
 0x47f   : > { %619 = sbr.rel (%p618_p1) target bundleno = 1276 (0x4fc), region = 296 }
 0x486 LB: >> { %s345_s20 = scalar_lea.vmem %s1256_s19, %s1108_s18  ;;  %s1145_s8 = smov 72   ;;  %vm352_vm9 = vcmask 647744   ;;  %s1108_s18 = sphi %s1106_s18, %s339_s18  }
 0x487   : >> { %v346_v18 = vld [vmem:[%s345_s20] sm:$0x1]  ;;  %s342_s26 = sadd.s32 %s1108_s18, %s1244_s10  ;;  %s339_s18 = sadd.s32 1, %s1108_s18  }
 0x488   : >> { %348 = vrot.lane.b32.xlu0 %v346_v18, %s1145_s8  ;;  %s343_s27 = sld [smem:[#allocation4 + %s342_s26]]  ;;  %p338_p2 = scmp.ge.s32.totalorder %s339_s18, %s335_s16 }
 0x48e   : >> { %s351_s29 = scalar_lea.vmem %s1247_s12, %s343_s27 [#allocation5] }
 0x4f5   : > { %341 = sbr.rel (!%p338_p2) target bundleno = 1158 (0x486), region = 302 }
 0x4fa   : >> { %v349_v19 = vpop.permute.xlu0 %348 }
 0x4fb   : >> { %353 = vst.msk [vmem:[%s351_s29] sm:$0x1] %vm352_vm9, %v349_v19 }
 0x4fc PF: > { %s354_s17 = sld [smem:[#allocation3 + %s334_s4]]   ;;  %s355_s14 = sadd.s32 11, %s1241_s9 }
 0x4fd   : > { %s356_s11 = sld [smem:[#allocation3 + %s355_s14]] }
 0x503   : > { %p623_p3 = scmp.ge.s32.totalorder %s354_s17, %s356_s11 }
 0x504   : > { %s1110_s13 = smov (!%p623_p3), %s354_s17  }
 0x505   : > { %624 = sbr.rel (%p623_p3) target bundleno = 1410 (0x582), region = 307 }
 0x50c LB: >> { %s366_s15 = scalar_lea.vmem %s1256_s19, %s1112_s13  ;;  %s1146_s0 = smov 80   ;;  %vm373_vm10 = vcmask 713344   ;;  %s1112_s13 = sphi %s1110_s13, %s360_s13  }
 0x50d   : >> { %v367_v20 = vld [vmem:[%s366_s15] sm:$0x1]  ;;  %s363_s18 = sadd.s32 %s1112_s13, %s1244_s10  ;;  %s360_s13 = sadd.s32 1, %s1112_s13  }
 0x50e   : >> { %369 = vrot.lane.b32.xlu0 %v367_v20, %s1146_s0  ;;  %s364_s20 = sld [smem:[#allocation4 + %s363_s18]]  ;;  %p359_p5 = scmp.ge.s32.totalorder %s360_s13, %s356_s11 }
 0x514   : >> { %s372_s16 = scalar_lea.vmem %s1247_s12, %s364_s20 [#allocation5] }
 0x57b   : > { %362 = sbr.rel (!%p359_p5) target bundleno = 1292 (0x50c), region = 313 }
 0x580   : >> { %v370_v21 = vpop.permute.xlu0 %369 }
 0x581   : >> { %374 = vst.msk [vmem:[%s372_s16] sm:$0x1] %vm373_vm10, %v370_v21 }
 0x582 PF: > { %s375_s4 = sld [smem:[#allocation3 + %s355_s14]]   ;;  %s376_s8 = sadd.s32 12, %s1241_s9 }
 0x583   : > { %s377_s26 = sld [smem:[#allocation3 + %s376_s8]] }
 0x589   : > { %p628_p6 = scmp.ge.s32.totalorder %s375_s4, %s377_s26 }
 0x58a   : > { %s1114_s27 = smov (!%p628_p6), %s375_s4  }
 0x58b   : > { %629 = sbr.rel (%p628_p6) target bundleno = 1544 (0x608), region = 318 }
 0x592 LB: >> { %s387_s29 = scalar_lea.vmem %s1256_s19, %s1116_s27  ;;  %s1147_s17 = smov 88   ;;  %vm394_vm11 = vcmask 778944   ;;  %s1116_s27 = sphi %s1114_s27, %s381_s27  }
 0x593   : >> { %v388_v22 = vld [vmem:[%s387_s29] sm:$0x1]  ;;  %s384_s13 = sadd.s32 %s1116_s27, %s1244_s10  ;;  %s381_s27 = sadd.s32 1, %s1116_s27  }
 0x594   : >> { %390 = vrot.lane.b32.xlu0 %v388_v22, %s1147_s17  ;;  %s385_s15 = sld [smem:[#allocation4 + %s384_s13]]  ;;  %p380_p7 = scmp.ge.s32.totalorder %s381_s27, %s377_s26 }
 0x59a   : >> { %s393_s11 = scalar_lea.vmem %s1247_s12, %s385_s15 [#allocation5] }
 0x601   : > { %383 = sbr.rel (!%p380_p7) target bundleno = 1426 (0x592), region = 324 }
 0x606   : >> { %v391_v23 = vpop.permute.xlu0 %390 }
 0x607   : >> { %395 = vst.msk [vmem:[%s393_s11] sm:$0x1] %vm394_vm11, %v391_v23 }
 0x608 PF: > { %s396_s14 = sld [smem:[#allocation3 + %s376_s8]]   ;;  %s397_s0 = sadd.s32 13, %s1241_s9 }
 0x609   : > { %s398_s18 = sld [smem:[#allocation3 + %s397_s0]] }
 0x60f   : > { %p633_p8 = scmp.ge.s32.totalorder %s396_s14, %s398_s18 }
 0x610   : > { %s1118_s20 = smov (!%p633_p8), %s396_s14  }
 0x611   : > { %634 = sbr.rel (%p633_p8) target bundleno = 1678 (0x68e), region = 329 }
 0x618 LB: >> { %s408_s16 = scalar_lea.vmem %s1256_s19, %s1120_s20  ;;  %s1148_s4 = smov 96   ;;  %vm415_vm12 = vcmask 844544   ;;  %s1120_s20 = sphi %s1118_s20, %s402_s20  }
 0x619   : >> { %v409_v24 = vld [vmem:[%s408_s16] sm:$0x1]  ;;  %s405_s27 = sadd.s32 %s1120_s20, %s1244_s10  ;;  %s402_s20 = sadd.s32 1, %s1120_s20  }
 0x61a   : >> { %411 = vrot.lane.b32.xlu0 %v409_v24, %s1148_s4  ;;  %s406_s29 = sld [smem:[#allocation4 + %s405_s27]]  ;;  %p401_p9 = scmp.ge.s32.totalorder %s402_s20, %s398_s18 }
 0x620   : >> { %s414_s26 = scalar_lea.vmem %s1247_s12, %s406_s29 [#allocation5] }
 0x687   : > { %404 = sbr.rel (!%p401_p9) target bundleno = 1560 (0x618), region = 335 }
 0x68c   : >> { %v412_v25 = vpop.permute.xlu0 %411 }
 0x68d   : >> { %416 = vst.msk [vmem:[%s414_s26] sm:$0x1] %vm415_vm12, %v412_v25 }
 0x68e PF: > { %s417_s8 = sld [smem:[#allocation3 + %s397_s0]]   ;;  %s418_s17 = sadd.s32 14, %s1241_s9 }
 0x68f   : > { %s419_s13 = sld [smem:[#allocation3 + %s418_s17]] }
 0x695   : > { %p638_p10 = scmp.ge.s32.totalorder %s417_s8, %s419_s13 }
 0x696   : > { %s1122_s15 = smov (!%p638_p10), %s417_s8  }
 0x697   : > { %639 = sbr.rel (%p638_p10) target bundleno = 1812 (0x714), region = 340 }
 0x69e LB: >> { %s429_s11 = scalar_lea.vmem %s1256_s19, %s1124_s15  ;;  %s1149_s14 = smov 104   ;;  %vm436_vm13 = vcmask 910144   ;;  %s1124_s15 = sphi %s1122_s15, %s423_s15  }
 0x69f   : >> { %v430_v26 = vld [vmem:[%s429_s11] sm:$0x1]  ;;  %s426_s20 = sadd.s32 %s1124_s15, %s1244_s10  ;;  %s423_s15 = sadd.s32 1, %s1124_s15  }
 0x6a0   : >> { %432 = vrot.lane.b32.xlu0 %v430_v26, %s1149_s14  ;;  %s427_s16 = sld [smem:[#allocation4 + %s426_s20]]  ;;  %p422_p11 = scmp.ge.s32.totalorder %s423_s15, %s419_s13 }
 0x6a6   : >> { %s435_s18 = scalar_lea.vmem %s1247_s12, %s427_s16 [#allocation5] }
 0x70d   : > { %425 = sbr.rel (!%p422_p11) target bundleno = 1694 (0x69e), region = 346 }
 0x712   : >> { %v433_v27 = vpop.permute.xlu0 %432 }
 0x713   : >> { %437 = vst.msk [vmem:[%s435_s18] sm:$0x1] %vm436_vm13, %v433_v27 }
 0x714 PF: > { %s438_s0 = sld [smem:[#allocation3 + %s418_s17]]   ;;  %s439_s4 = sadd.s32 15, %s1241_s9 }
 0x715   : > { %s440_s27 = sld [smem:[#allocation3 + %s439_s4]] }
 0x71b   : > { %p643_p12 = scmp.ge.s32.totalorder %s438_s0, %s440_s27 }
 0x71c   : > { %s1126_s29 = smov (!%p643_p12), %s438_s0  }
 0x71d   : > { %644 = sbr.rel (%p643_p12) target bundleno = 1946 (0x79a), region = 351 }
 0x724 LB: >> { %s450_s26 = scalar_lea.vmem %s1256_s19, %s1128_s29  ;;  %s1150_s8 = smov 112   ;;  %vm457_vm14 = vcmask 975744   ;;  %s1128_s29 = sphi %s1126_s29, %s444_s29  }
 0x725   : >> { %v451_v28 = vld [vmem:[%s450_s26] sm:$0x1]  ;;  %s447_s15 = sadd.s32 %s1128_s29, %s1244_s10  ;;  %s444_s29 = sadd.s32 1, %s1128_s29  }
 0x726   : >> { %453 = vrot.lane.b32.xlu0 %v451_v28, %s1150_s8  ;;  %s448_s11 = sld [smem:[#allocation4 + %s447_s15]]  ;;  %p443_p13 = scmp.ge.s32.totalorder %s444_s29, %s440_s27 }
 0x72c   : >> { %s456_s13 = scalar_lea.vmem %s1247_s12, %s448_s11 [#allocation5] }
 0x793   : > { %446 = sbr.rel (!%p443_p13) target bundleno = 1828 (0x724), region = 357 }
 0x798   : >> { %v454_v29 = vpop.permute.xlu0 %453 }
 0x799   : >> { %458 = vst.msk [vmem:[%s456_s13] sm:$0x1] %vm457_vm14, %v454_v29 }
 0x79a PF: > { %s459_s17 = sld [smem:[#allocation3 + %s439_s4]]   ;;  %s460_s14 = sadd.s32 16, %s1241_s9 }
 0x79b   : > { %s461_s20 = sld [smem:[#allocation3 + %s460_s14]] }
 0x7a1   : > { %p648_p1 = scmp.ge.s32.totalorder %s459_s17, %s461_s20 }
 0x7a2   : > { %s1130_s16 = smov (!%p648_p1), %s459_s17  }
 0x7a3   : > { %649 = sbr.rel (%p648_p1) target bundleno = 2080 (0x820), region = 362 }
 0x7aa LB: >> { %s471_s18 = scalar_lea.vmem %s1256_s19, %s1132_s16  ;;  %s1151_s0 = smov 120   ;;  %vm478_vm15 = vcmask 1041344   ;;  %s1132_s16 = sphi %s1130_s16, %s465_s16  }
 0x7ab   : >> { %v472_v30 = vld [vmem:[%s471_s18] sm:$0x1]  ;;  %s468_s29 = sadd.s32 %s1132_s16, %s1244_s10  ;;  %s465_s16 = sadd.s32 1, %s1132_s16  }
 0x7ac   : >> { %474 = vrot.lane.b32.xlu0 %v472_v30, %s1151_s0  ;;  %s469_s26 = sld [smem:[#allocation4 + %s468_s29]]  ;;  %p464_p2 = scmp.ge.s32.totalorder %s465_s16, %s461_s20 }
 0x7b2   : >> { %s477_s27 = scalar_lea.vmem %s1247_s12, %s469_s26 [#allocation5] }
 0x819   : > { %467 = sbr.rel (!%p464_p2) target bundleno = 1962 (0x7aa), region = 368 }
 0x81e   : >> { %v475_v31 = vpop.permute.xlu0 %474 }
 0x81f   : >> { %479 = vst.msk [vmem:[%s477_s27] sm:$0x1] %vm478_vm15, %v475_v31 }
 0x820 PF: > { %s696_s9 = sshll.u32 %s1060_s23, 8  ;;  %s496_s11 = sshll.u32 %s1247_s12, 4  ;;  %s1328_s11 = int_to_ptr.vmem [resolvable:$true] %s496_s11 }
 0x821   : > { %s1325_s15 = scalar_lea.hbm %s1380_s3, %s696_s9  ;;  %s1332_s13 = scalar_lea.sflag [#allocation6], %s133_s7 }
 0x822   : > { %s924_s10 = scalar_lea.vmem %s1328_s11, 256  ;;  %s1152_s23 = smov [#allocation5]  }
 0x823   : > { %p925_p3 = scmp.ne.s32.totalorder %s1328_s11, %s924_s10  ;;  %s928_s19 = sshll.u32 %s1152_s23, 4  ;;  %s929_s19 = int_to_ptr.vmem [resolvable:$false] %s928_s19 }
 0x824   : > { %s930_s17 = scalar_lea.vmem %s929_s19, 512  ;;  %p931_p7 = scmp.lt.s32.totalorder %s1328_s11, %s929_s19 }
 0x825   : > { %p926_p5 = pnand %p925_p3, %p1221_p0  ;;  %p932_p8 = scmp.lt.s32.totalorder %s930_s17, %s924_s10 }
 0x827   : > { %p927_p6 = pneg %p926_p5  ;;  %p933_p9 = por %p932_p8, %p931_p7 }
 0x829   : > { %p934_p10 = pnand %p933_p9, %p927_p6 }
 0x82b   : > { %937 = shalt.err (!%p934_p10)
}
 0x82c   : > { %s938_s7 = scalar_lea.hbm %s1325_s15, 256  ;;  %s942_s20 = scalar_lea.hbm %s1380_s3, 512 }
 0x82d   : > { %p939_p11 = scmp.ne.s32.totalorder %s1325_s15, %s938_s7  ;;  %p943_p1 = scmp.lt.u32.totalorder %s1325_s15, %s1380_s3 }
 0x82e   : > { %p944_p2 = scmp.lt.u32.totalorder %s942_s20, %s938_s7  ;;  %p946_p5 = scmp.lt.u32.totalorder %s938_s7, %s1325_s15 }
 0x82f   : > { %p940_p12 = pnand %p939_p11, %p1221_p0 }
 0x830   : > { %p945_p3 = por %p944_p2, %p943_p1 }
 0x831   : > { %p941_p13 = pneg %p940_p12 }
 0x832   : > { %p947_p6 = por %p946_p5, %p945_p3 }
 0x834   : > { %p948_p7 = pnand %p947_p6, %p941_p13 }
 0x836   : > { %951 = shalt.err (!%p948_p7)
}
 0x837   : > { %s1153_s0 = smov 128   ;;  %s1154_s29 = smov 8  }
 0x838   : > { %697 = dma.vmem_to_hbm [thread:$0]  (%p1221_p0), %s1328_s11, 256, %s1325_s15, %s1332_s13, %s1153_s0, %s1153_s0, %s1154_s29  }
 0x839 PF: > { %p703_p8 = scmp.ge.s32.totalorder %s1068_s25, 2  ;;  %s511_s26 = sand.u32 1, %s1048_s1  }
 0x83a   : > { %s512_s27 = scalar_lea.sflag [#allocation6], %s511_s26 }
 0x83b   : > { %p700_p9 = pnand %p703_p8, %p1228_p4 }
 0x83d   : > { %1043 = dma.done.wait (!%p700_p9), %s512_s27, 256  }
 0x83e   : > { %1045 = vsyncadd (!%p700_p9), %s512_s27, 4294967040  ;;  %s26_s25 = sadd.s32 1, %s1068_s25   ;;  %s1384_s1 = smov %s1052_s21 }
 0x83f   : > { %p23_p10 = scmp.ge.s32.totalorder %s26_s25, 4   ;;  %s1385_s21 = smov %s1056_s22 }
 0x840   : > { %s1386_s22 = smov %s1234_s6  ;;  %s1387_s23 = smov %s1064_s24 }
 0x841   : > { %s1388_s24 = smov %s1390_s28  ;;  %25 = sbr.rel (!%p23_p10) target bundleno = 29 (0x1d), region = 379 }
 0x848   :  { %517 = vsyncpa [#allocation6], 1 }
 0x849   :  { %519 = vsyncpa [#allocation6 + $0x1], 1 }

</bundles_post_ra>
